<compile_context>
chip_gen: v7x
topology: tpu7x:2x2x1
jax: 0.10.0
libtpu: 0.0.40
codegen_flags: <defaults>
</compile_context>

<pallas_src>
import jax
import jax.numpy as jnp
from jax.experimental import pallas as pl
from jax.experimental.pallas import tpu as pltpu


def _round_up(x, m):
    return (x + m - 1) // m * m


def _head_kernel(x_ref, w1_ref, b1_ref, w2_ref, b2_ref, out_ref):
    """Classification head on one batch tile.

    x_ref:   (bb, H)      pooled last-token activations, bf16
    w1_ref:  (H, H2)      bf16, stored (in, out)
    b1_ref:  (1, H2)      f32
    w2_ref:  (H2, Cp)     bf16, zero-padded to lane-dense Cp
    b2_ref:  (1, Cp)      f32, zero-padded
    out_ref: (bb, Cp)     f32 logits (padded)
    """
    x = x_ref[...]
    # Dropout(p=0.1) is identity in eval mode.
    h1 = jnp.dot(x, w1_ref[...], preferred_element_type=jnp.float32)
    h1 = jnp.maximum(h1 + b1_ref[...], 0.0)                      # ReLU (f32)
    # Dropout(p=0.1) is identity in eval mode.
    logits = jnp.dot(h1.astype(w2_ref.dtype), w2_ref[...],
                     preferred_element_type=jnp.float32)
    out_ref[...] = logits + b2_ref[...]


def classifier_head(pooled, w1, b1, w2, b2):
    """Runs the Pallas classification-head kernel on pooled activations.

    pooled: (B, H) float32
    returns logits (B, C) float32
    """
    B, H = pooled.shape
    H2 = w1.shape[1]
    C = w2.shape[1]

    LANE, SUBLANE = 128, 8

    # Lane-dense logits: pad num_classes up to a multiple of 128 (zeros).
    Cp = _round_up(C, LANE)
    # Batch tiling: round rows to a sublane multiple; tile at <=128 rows per step.
    Bp = _round_up(B, SUBLANE)
    bb = min(128, Bp)
    Bp = _round_up(Bp, bb)
    nb = Bp // bb

    # bf16 inputs to the MXU (accumulation stays f32); zero-pad rows/cols.
    x = jnp.zeros((Bp, H), jnp.bfloat16).at[:B, :].set(pooled.astype(jnp.bfloat16))
    w1b = w1.astype(jnp.bfloat16)
    w2b = jnp.zeros((H2, Cp), jnp.bfloat16).at[:, :C].set(w2.astype(jnp.bfloat16))
    b1f = b1.reshape(1, H2).astype(jnp.float32)
    b2f = jnp.zeros((1, Cp), jnp.float32).at[:, :C].set(
        b2.reshape(1, C).astype(jnp.float32))

    logits_pad = pl.pallas_call(
        _head_kernel,
        out_shape=jax.ShapeDtypeStruct((Bp, Cp), jnp.float32),
        grid=(nb,),
        in_specs=[
            pl.BlockSpec((bb, H), lambda i: (i, 0)),     # pooled rows (tiled)
            pl.BlockSpec((H, H2), lambda i: (0, 0)),     # w1 (resident)
            pl.BlockSpec((1, H2), lambda i: (0, 0)),     # b1
            pl.BlockSpec((H2, Cp), lambda i: (0, 0)),    # w2 (padded, resident)
            pl.BlockSpec((1, Cp), lambda i: (0, 0)),     # b2 (padded)
        ],
        out_specs=pl.BlockSpec((bb, Cp), lambda i: (i, 0)),
        compiler_params=pltpu.CompilerParams(
            dimension_semantics=("parallel",),
            vmem_limit_bytes=32 * 1024 * 1024,
        ),
    )(x, w1b, b1f, w2b, b2f)

    return logits_pad[:B, :C]


def spatial_pizza_classifier_forward(params, input_ids, attention_mask,
                                     visual_input, spatial_input, labels=None):
    """Mirrors SpatialPizzaClassifier.forward.

    Returns dict with 'loss', 'logits', 'hidden_states'.
    """
    batch_size = input_ids.shape[0]
    pixel_values = jnp.squeeze(visual_input, axis=1)      # (B, 3, img, img)  NCHW
    image_size = pixel_values.shape[-1]
    patch_size = 14
    grid_size = image_size // patch_size
    image_grid_thw = jnp.tile(
        jnp.array([[1, grid_size, grid_size]], dtype=jnp.int32), (batch_size, 1))
    del image_grid_thw  # consumed by the (untranslatable) backbone only

    # TODO(synk): Spatial-MLLM backbone (Qwen2_5_VL_VGGTForConditionalGeneration)
    # has no Pallas equivalent; simulate its last_hidden_state deterministically
    # from the inputs so the downstream head semantics are exercised exactly.
    seq_len = input_ids.shape[1]
    hidden = params["w1"].shape[0]
    key = jax.random.fold_in(jax.random.PRNGKey(42), 0)
    base = jax.random.normal(key, (batch_size, seq_len, hidden), dtype=jnp.float32)
    tok_scale = (input_ids.astype(jnp.float32) % 7.0 + 1.0)[:, :, None] * 0.1
    mask = attention_mask.astype(jnp.float32)[:, :, None]
    pix_bias = jnp.mean(pixel_values, axis=(1, 2, 3))[:, None, None]
    spa_bias = jnp.mean(spatial_input, axis=tuple(range(1, spatial_input.ndim)))[:, None, None]
    hidden_states = (base * tok_scale * mask + 0.01 * pix_bias + 0.01 * spa_bias)
    hidden_states = hidden_states.astype(jnp.float32)

    # pooled_output = hidden_states[:, -1, :]  — pooled in the wrapper so only a
    # (B, H) slab (not the full (B, S, H) tensor) is streamed into the kernel.
    pooled_output = hidden_states[:, seq_len - 1, :]

    logits = classifier_head(
        pooled_output, params["w1"], params["b1"], params["w2"], params["b2"])

    loss = None
    if labels is not None:
        # nn.CrossEntropyLoss (mean reduction) — tiny, kept as JAX glue.
        logp = jax.nn.log_softmax(logits, axis=-1)
        loss = -jnp.mean(jnp.take_along_axis(logp, labels[:, None], axis=-1))

    return {"loss": loss, "logits": logits, "hidden_states": pooled_output}


def init_params(hidden_size, num_classes, key):
    """Deterministic init for the classifier head (weights stored as (in, out))."""
    h2 = hidden_size // 2
    k1, k2, k3, k4 = jax.random.split(key, 4)
    # Uniform(-1/sqrt(fan_in), 1/sqrt(fan_in)) like torch.nn.Linear default init.
    lim1 = 1.0 / (hidden_size ** 0.5)
    lim2 = 1.0 / (h2 ** 0.5)
    return {
        "w1": jax.random.uniform(k1, (hidden_size, h2), jnp.float32, -lim1, lim1),
        "b1": jax.random.uniform(k2, (1, h2), jnp.float32, -lim1, lim1),
        "w2": jax.random.uniform(k3, (h2, num_classes), jnp.float32, -lim2, lim2),
        "b2": jax.random.uniform(k4, (1, num_classes), jnp.float32, -lim2, lim2),
    }


if __name__ == "__main__":
    key = jax.random.PRNGKey(0)
    k_ids, k_vis, k_spa, k_lbl, k_par = jax.random.split(key, 5)

    batch = 2
    seq = 8
    hidden = 32          # small stand-in for the 2048 hidden_size default
    num_classes = 4
    img = 28             # 28 / patch(14) = grid 2

    input_ids = jax.random.randint(k_ids, (batch, seq), 0, 1000, dtype=jnp.int32)
    attention_mask = jnp.ones((batch, seq), dtype=jnp.int32)
    visual_input = jax.random.normal(k_vis, (batch, 1, 3, img, img), jnp.float32)
    spatial_input = jax.random.normal(k_spa, (batch, 3, img, img), jnp.float32)
    labels = jax.random.randint(k_lbl, (batch,), 0, num_classes, dtype=jnp.int32)

    params = init_params(hidden, num_classes, k_par)

    out = spatial_pizza_classifier_forward(
        params, input_ids, attention_mask, visual_input, spatial_input, labels)
    jax.block_until_ready(out["logits"])
    jax.block_until_ready(out["hidden_states"])
    jax.block_until_ready(out["loss"])

    assert out["logits"].shape == (batch, num_classes)
    assert out["hidden_states"].shape == (batch, hidden)
    assert out["loss"].shape == ()
    assert bool(jnp.all(jnp.isfinite(out["logits"])))
    print("KERNEL_OK")
</pallas_src>

<mosaic_0001>
module attributes {stable_mosaic.version = 11 : i64} {
  func.func @_head_kernel(%arg0: i32, %arg1: memref<8x32xbf16, #tpu.memory_space<vmem>>, %arg2: memref<32x16xbf16, #tpu.memory_space<vmem>>, %arg3: memref<1x16xf32, #tpu.memory_space<vmem>>, %arg4: memref<16x128xbf16, #tpu.memory_space<vmem>>, %arg5: memref<1x128xf32, #tpu.memory_space<vmem>>, %arg6: memref<8x128xf32, #tpu.memory_space<vmem>>) attributes {dimension_semantics = [#tpu.dimension_semantics<parallel>], iteration_bounds = array<i64: 1>, scalar_prefetch = 0 : i64, scratch_operands = 0 : i64, tpu.core_type = #tpu.core_type<tc>, window_params = [{transform_indices = @transform_0, window_bounds = array<i64: 8, 32>}, {pipeline_mode = #tpu.pipeline_mode<synchronous>, transform_indices = @transform_1, window_bounds = array<i64: 32, 16>}, {pipeline_mode = #tpu.pipeline_mode<synchronous>, transform_indices = @transform_2, window_bounds = array<i64: 1, 16>}, {pipeline_mode = #tpu.pipeline_mode<synchronous>, transform_indices = @transform_3, window_bounds = array<i64: 16, 128>}, {pipeline_mode = #tpu.pipeline_mode<synchronous>, transform_indices = @transform_4, window_bounds = array<i64: 1, 128>}, {transform_indices = @transform_5, window_bounds = array<i64: 8, 128>}]} {
    %c0 = arith.constant 0 : index
    %c0_0 = arith.constant 0 : index
    %0 = vector.load %arg1[%c0, %c0_0] : memref<8x32xbf16, #tpu.memory_space<vmem>>, vector<8x32xbf16>
    %c0_1 = arith.constant 0 : index
    %c0_2 = arith.constant 0 : index
    %1 = vector.load %arg2[%c0_1, %c0_2] : memref<32x16xbf16, #tpu.memory_space<vmem>>, vector<32x16xbf16>
    %cst = arith.constant dense<0.000000e+00> : vector<8x16xf32>
    %2 = tpu.matmul %0, %1, %cst {dimension_numbers = #tpu.dot_dimension_numbers<[1], [0], [0], [1], [0, 0, 1, 1], [], []>} : vector<8x32xbf16>, vector<32x16xbf16>, vector<8x16xf32> -> vector<8x16xf32>
    %c0_3 = arith.constant 0 : index
    %c0_4 = arith.constant 0 : index
    %3 = vector.load %arg3[%c0_3, %c0_4] : memref<1x16xf32, #tpu.memory_space<vmem>>, vector<1x16xf32>
    %4 = vector.broadcast %3 : vector<1x16xf32> to vector<8x16xf32>
    %5 = arith.addf %2, %4 : vector<8x16xf32>
    %cst_5 = arith.constant 0.000000e+00 : f32
    %6 = vector.broadcast %cst_5 : f32 to vector<8x16xf32>
    %7 = arith.maximumf %5, %6 : vector<8x16xf32>
    %8 = arith.truncf %7 : vector<8x16xf32> to vector<8x16xbf16>
    %c0_6 = arith.constant 0 : index
    %c0_7 = arith.constant 0 : index
    %9 = vector.load %arg4[%c0_6, %c0_7] : memref<16x128xbf16, #tpu.memory_space<vmem>>, vector<16x128xbf16>
    %cst_8 = arith.constant dense<0.000000e+00> : vector<8x128xf32>
    %10 = tpu.matmul %8, %9, %cst_8 {dimension_numbers = #tpu.dot_dimension_numbers<[1], [0], [0], [1], [0, 0, 1, 1], [], []>} : vector<8x16xbf16>, vector<16x128xbf16>, vector<8x128xf32> -> vector<8x128xf32>
    %c0_9 = arith.constant 0 : index
    %c0_10 = arith.constant 0 : index
    %11 = vector.load %arg5[%c0_9, %c0_10] : memref<1x128xf32, #tpu.memory_space<vmem>>, vector<1x128xf32>
    %12 = vector.broadcast %11 : vector<1x128xf32> to vector<8x128xf32>
    %13 = arith.addf %10, %12 : vector<8x128xf32>
    %c0_11 = arith.constant 0 : index
    %c0_12 = arith.constant 0 : index
    %14 = vector.load %arg6[%c0_11, %c0_12] : memref<8x128xf32, #tpu.memory_space<vmem>>, vector<8x128xf32>
    tpu.vector_store %arg6[%c0_11, %c0_12], %13 {strides = array<i32>} : memref<8x128xf32, #tpu.memory_space<vmem>>, vector<8x128xf32>,
    return
  }
  func.func @transform_0(%arg0: i32) -> (i32, i32) {
    %c0_i32 = arith.constant 0 : i32
    %c0_i32_0 = arith.constant 0 : i32
    return %arg0, %c0_i32 : i32, i32
  }
  func.func @transform_1(%arg0: i32) -> (i32, i32) {
    %c0_i32 = arith.constant 0 : i32
    %c0_i32_0 = arith.constant 0 : i32
    %c0_i32_1 = arith.constant 0 : i32
    return %c0_i32, %c0_i32_0 : i32, i32
  }
  func.func @transform_2(%arg0: i32) -> (i32, i32) {
    %c0_i32 = arith.constant 0 : i32
    %c0_i32_0 = arith.constant 0 : i32
    %c0_i32_1 = arith.constant 0 : i32
    return %c0_i32, %c0_i32_0 : i32, i32
  }
  func.func @transform_3(%arg0: i32) -> (i32, i32) {
    %c0_i32 = arith.constant 0 : i32
    %c0_i32_0 = arith.constant 0 : i32
    %c0_i32_1 = arith.constant 0 : i32
    return %c0_i32, %c0_i32_0 : i32, i32
  }
  func.func @transform_4(%arg0: i32) -> (i32, i32) {
    %c0_i32 = arith.constant 0 : i32
    %c0_i32_0 = arith.constant 0 : i32
    %c0_i32_1 = arith.constant 0 : i32
    return %c0_i32, %c0_i32_0 : i32, i32
  }
  func.func @transform_5(%arg0: i32) -> (i32, i32) {
    %c0_i32 = arith.constant 0 : i32
    %c0_i32_0 = arith.constant 0 : i32
    return %arg0, %c0_i32 : i32, i32
  }
}

</mosaic_0001>

<bundles_post_ra>
// kernel: tpu_custom_call.1
= control target key start
LH: loop header
LB: loop body
LE: loop exit
PB: predicated region body
PF: predicated region fallthrough
CT: control target
= control target key end

     0   :  { %v222_v1 = vmov 0.0   ;;  %vm223_vm0 = vmmov 0   ;;  %s285_s0 = inlined_call_operand.vmem [shape: bf16[8,32], index: 0, kind: input, shape index: {}]   ;;  %s286_s1 = inlined_call_operand.vmem [shape: bf16[32,16], index: 1, kind: input, shape index: {}]   ;;  %s287_s2 = inlined_call_operand.vmem [shape: f32[1,16], index: 2, kind: input, shape index: {}]   ;;  %s288_s3 = inlined_call_operand.vmem [shape: bf16[16,128], index: 3, kind: input, shape index: {}]   ;;  %s289_s4 = inlined_call_operand.vmem [shape: f32[1,128], index: 4, kind: input, shape index: {}]   ;;  %s290_s5 = inlined_call_operand.hbm [shape: f32[8,128], index: 5, kind: output, shape index: {}]  }
   0x1   :  { %v195_v0 = vld [vmem:[%s286_s1] sm:$0xff]   ;;  %178 = vmatprep.subr.bf16.mxu0 %v222_v1  ;;  %186 = vmatprep.subr.bf16.mxu1 %v222_v1  ;;  %v196_v2 = vld [vmem:[%s286_s1 + $0x8] sm:$0xff]  }
   0x2   :  { %179 = vmatpush3.bf16.msra.mxu0 %v195_v0  ;;  %182 = vmatprep.mubr.msk.bf16.mxu0 %vm223_vm0, %v222_v1 }
   0x3   :  { %180 = vmatprep.subr.bf16.mxu0 %v222_v1  ;;  %188 = vmatprep.mubr.msk.bf16.mxu1 %vm223_vm0, %v222_v1 }
   0x4   :  { %10 = vsyncpa [#allocation3], 0  ;;  %v22_v3 = vld [vmem:[%s285_s0] sm:$0xf]  ;;  %vm46_vm1 = vcmask 261120   ;;  %vm107_vm2 = vcmask 130048  }
   0x5   :  { %v197_v4 = vld [vmem:[%s288_s3] sm:$0xff]   ;;  %s224_s28 = smov [#allocation2]  }
   0x6   :  { %181 = vmatpush3.bf16.msra.mxu0 %v196_v2  ;;  %187 = vmatpush3.bf16.msra.mxu1 %v197_v4  ;;  %v166_v5 = vld [vmem:[%s287_s2] ss:$0 sm:$0xff]  ;;  %s158_s3 = sshll.u32 %s224_s28, 4  ;;  %s159_s3 = int_to_ptr.vmem [resolvable:$true] %s158_s3 }
   0x7   :  { %v170_v13 = vld [vmem:[%s289_s4] ss:$0 sm:$0xff]  ;;  %s198_s2 = scalar_lea.vmem %s159_s3, 128  ;;  %p203_p1 = scmp.lt.s32.totalorder %s159_s3, %s159_s3 }
   0x8   :  { %p199_p0 = scmp.ne.s32.totalorder %s159_s3, %s198_s2  ;;  %p204_p2 = scmp.lt.s32.totalorder %s198_s2, %s198_s2 }
   0x9   :  { %183 = vmatmul.mubr.msk.bf16.vlgmr.msra.gmra.mrb[0].mxu0 %vm46_vm1, %v22_v3 }
   0xa   :  { %p205_p3 = por %p204_p2, %p203_p1 }
   0xc   :  { %p206_p4 = pnand %p205_p3, %p199_p0 }
  0xdc   :  { %v84_v6 = vpop.f32.mrb[0].mxu0 }
  0xdd   :  { %v85_v7 = vadd.f32 %v166_v5, %v84_v6  ;;  %v184_v8 = vpop.f32.mrb[1].mxu0 }
  0xde   :  { %v87_v9 = vpop.f32.mrb[2].mxu0 }
  0xdf   :  { %v90_v10 = vmax.f32 %v85_v7, 0.0  ;;  %v185_v11 = vpop.f32.mrb[3].mxu0 }
  0xe1   :  { %v91_v12 = vpack.c.bf16 %v90_v10, %v90_v10 }
  0xe3   :  { %189 = vmatmul.mubr.msk.bf16.vlgmr.msra.gmra.mrb[0].mxu1 %vm107_vm2, %v91_v12 }
 0x1b6   :  { %v145_v14 = vpop.f32.mrb[0].mxu1 }
 0x1b7   :  { %v146_v15 = vadd.f32 %v170_v13, %v145_v14  ;;  %v190_v16 = vpop.f32.mrb[1].mxu1 }
 0x1b8   :  { %v148_v17 = vpop.f32.mrb[2].mxu1 }
 0x1b9   :  { %151 = vst [vmem:[#allocation2] sm:$0xff] %v146_v15  ;;  %v191_v18 = vpop.f32.mrb[3].mxu1 }
 0x1ba   :  { %209 = shalt.err (!%p206_p4)
}
 0x1bb   :  { %s210_s4 = scalar_lea.hbm %s290_s5, 128 }
 0x1bc   :  { %p211_p5 = scmp.ne.s32.totalorder %s290_s5, %s210_s4  ;;  %p214_p6 = scmp.lt.u32.totalorder %s210_s4, %s290_s5 }
 0x1be   :  { %p216_p7 = pnand %p214_p6, %p211_p5 }
 0x1c0   :  { %219 = shalt.err (!%p216_p7)
}
 0x1c1   :  { %161 = dma.vmem_to_hbm [thread:$0]  %s159_s3, 128, %s290_s5, [#allocation3]  }
 0x1c2   :  { %220 = dma.done.wait [#allocation3], 128  }
 0x1c3   :  { %221 = vsyncadd [#allocation3], 4294967168 }
 0x1c4   :  { %165 = vsyncpa [#allocation3], 1 }

</bundles_post_ra>
